<compile_context>
chip_gen: v6e
topology: v6e:2x2x1
jax: 0.10.0
libtpu: 0.0.40
codegen_flags: <defaults>
</compile_context>

<pallas_src>
import jax
import jax.numpy as jnp
from jax.experimental import pallas as pl
from jax.experimental.pallas import tpu as pltpu


_SUBLANE = 8                        # f32 sublane tile (second-to-last dim)
_TILE_BYTES = 2 << 20               # ~2 MiB/stream/tile: 4 streams x 2 buffers = 16 MiB VMEM
_SINGLE_TILE_MAX_BYTES = 1 << 20    # below this, run the whole problem as one tile (no grid)
_SLAB_WIDTHS = (2048, 1024, 512, 256, 128)   # lane-dense slab widths (multiples of 128)


def _round_up(x, m):
    return ((x + m - 1) // m) * m


# ----------------------------------------------------------------------------
# Kernel: z = eps * exp(0.5 * log_var) + mu   (purely elementwise, memory-bound)
# ----------------------------------------------------------------------------
def _reparam_kernel(mu_ref, log_var_ref, eps_ref, z_ref):
    std = jnp.exp(0.5 * log_var_ref[...].astype(jnp.float32))          # EUP transcendental
    z = eps_ref[...].astype(jnp.float32) * std + mu_ref[...].astype(jnp.float32)  # VPU (f32, v5e-safe)
    z_ref[...] = z.astype(z_ref.dtype)


def reparameterize(mu, log_var, eps, *, out_dtype=None,
                   tile_bytes=_TILE_BYTES,
                   single_tile_max_bytes=_SINGLE_TILE_MAX_BYTES):
    """Pallas-backed reparameterization: z = eps * exp(0.5 * log_var) + mu.

    eps is an explicit input (drawn with jax.random.normal by the caller), which keeps
    the kernel portable and the result independent of the tiling choice.
    # TODO(synk): on real TPU hardware eps could be drawn in-kernel with
    # pltpu.prng_seed / pltpu.prng_random_bits to drop one HBM read stream, but those
    # primitives do not lower on the CPU/interpret backend, so eps stays an input.
    """
    assert mu.shape == log_var.shape == eps.shape and mu.ndim == 2
    if out_dtype is None:
        out_dtype = mu.dtype
    orig_shape = mu.shape
    n = mu.size
    total_bytes = n * 4   # per-stream f32 bytes

    # ---------------- small-input fast path: one tile, no grid, no padding ------------
    if total_bytes <= single_tile_max_bytes:
        return pl.pallas_call(
            _reparam_kernel,
            out_shape=jax.ShapeDtypeStruct(orig_shape, out_dtype),
        )(mu, log_var, eps)

    # ---------------- tiled path -------------------------------------------------------
    # Elementwise op => reshape (free, contiguous) to a lane-dense slab (R, C) with C a
    # wide multiple of 128 when the flat size allows it; otherwise tile the original
    # (B, L) rows directly (full rows are contiguous in HBM, so DMAs stay dense even if
    # L < 128 lanes).  No jnp.pad / output slice anywhere.
    C = None
    for c in _SLAB_WIDTHS:
        if n % c == 0 and n // c >= _SUBLANE:
            C = c
            break
    if C is not None:
        R = n // C
        mu2 = mu.reshape(R, C)
        lv2 = log_var.reshape(R, C)
        eps2 = eps.reshape(R, C)
    else:
        R, C = orig_shape
        mu2, lv2, eps2 = mu, log_var, eps

    bytes_per_row = C * 4
    rows_cap = max(_SUBLANE, (tile_bytes // bytes_per_row) // _SUBLANE * _SUBLANE)
    # Ensure >= 2 grid steps so dimension_semantics=("parallel",) can shard the batch
    # tiles across both v7x TensorCores.
    rows_half = _round_up(pl.cdiv(R, 2), _SUBLANE)
    tb = max(_SUBLANE, min(rows_cap, rows_half, _round_up(R, _SUBLANE)))
    grid = (pl.cdiv(R, tb),)   # ragged last block (if any) is masked by Pallas

    tile = pl.BlockSpec((tb, C), lambda i: (i, 0))
    z2 = pl.pallas_call(
        _reparam_kernel,
        out_shape=jax.ShapeDtypeStruct((R, C), out_dtype),
        grid=grid,
        in_specs=[tile, tile, tile],
        out_specs=tile,
        compiler_params=pltpu.CompilerParams(
            dimension_semantics=("parallel",),      # shard batch tiles across TCs (v7x)
            vmem_limit_bytes=32 * 1024 * 1024,
        ),
    )(mu2, lv2, eps2)
    return z2.reshape(orig_shape)


# ----------------------------------------------------------------------------
# Module equivalent
# ----------------------------------------------------------------------------
class Encoder:
    """Pallas/JAX equivalent of the reference (stub) PyTorch Encoder."""

    def __init__(self, latent_size):
        self.latent_size = latent_size
        # Reference __init__ defines no layers / parameters.

    def forward(self, x):
        # Faithful to the reference: forward is an unimplemented stub.
        mu = None
        log_var = None
        return (mu, log_var)

    __call__ = forward

    def sample_latent(self, x, key=None):
        mu, log_var = self.forward(x)
        # TODO(synk): reference forward() is a stub returning (None, None); no encoder
        # network exists to produce mu/log_var, so (like the PyTorch original) this
        # cannot produce a sample — use sample_latent_from(mu, log_var, key) instead.
        if mu is None or log_var is None:
            return (None, mu, log_var)
        return self.sample_latent_from(mu, log_var, key)

    def sample_latent_from(self, mu, log_var, key):
        """Reparameterization trick (the module's only concrete compute)."""
        eps = jax.random.normal(key, mu.shape, dtype=jnp.float32)
        z = reparameterize(mu, log_var, eps)
        return z, mu, log_var


if __name__ == "__main__":
    key = jax.random.PRNGKey(0)
    B, latent = 2, 32

    enc = Encoder(latent_size=latent)

    k_x, k_mu, k_lv, k_eps, k_big = jax.random.split(key, 5)
    x = jax.random.normal(k_x, (B, 1, 28, 28), dtype=jnp.float32)  # NCHW MNIST input (unused by stub)

    # forward() is a stub (returns (None, None)) — verify that, then feed synthetic
    # deterministic mu / log_var into the Pallas reparameterization kernel.
    mu_none, lv_none = enc.forward(x)
    assert mu_none is None and lv_none is None

    mu = jax.random.normal(k_mu, (B, latent), dtype=jnp.float32)
    log_var = 0.1 * jax.random.normal(k_lv, (B, latent), dtype=jnp.float32)

    # Module-level path (draws eps from the key, matching torch.randn_like semantics).
    z, mu_out, lv_out = enc.sample_latent_from(mu, log_var, k_eps)
    z = jax.block_until_ready(z)
    assert z.shape == (B, latent)
    assert bool(jnp.all(jnp.isfinite(z)))

    # Exact reference check (small-input single-tile fast path).
    eps = jax.random.normal(k_eps, mu.shape, dtype=jnp.float32)
    z_ref = eps * jnp.exp(0.5 * log_var) + mu
    assert jnp.allclose(z, z_ref, rtol=1e-5, atol=1e-5)

    # Same key -> identical draw; different key -> different draw.
    z_again, _, _ = enc.sample_latent_from(mu, log_var, k_eps)
    assert jnp.array_equal(z, jax.block_until_ready(z_again))
    z_other, _, _ = enc.sample_latent_from(mu, log_var, jax.random.PRNGKey(1))
    assert not jnp.array_equal(z, jax.block_until_ready(z_other))

    # Exercise the tiled path (multiple "parallel" grid steps + ragged last block) at a
    # still-small size by shrinking the tile caps.
    B2 = 100
    kb_mu, kb_lv, kb_eps = jax.random.split(k_big, 3)
    mu_b = jax.random.normal(kb_mu, (B2, latent), dtype=jnp.float32)
    lv_b = 0.1 * jax.random.normal(kb_lv, (B2, latent), dtype=jnp.float32)
    eps_b = jax.random.normal(kb_eps, (B2, latent), dtype=jnp.float32)
    z_b = jax.block_until_ready(
        reparameterize(mu_b, lv_b, eps_b, tile_bytes=8192, single_tile_max_bytes=1024))
    z_b_ref = eps_b * jnp.exp(0.5 * lv_b) + mu_b
    assert z_b.shape == (B2, latent)
    assert jnp.allclose(z_b, z_b_ref, rtol=1e-5, atol=1e-5)

    print("KERNEL_OK")
</pallas_src>

<mosaic_0001>
module attributes {stable_mosaic.version = 11 : i64} {
  func.func @_reparam_kernel(%arg0: memref<2x32xf32, #tpu.memory_space<vmem>>, %arg1: memref<2x32xf32, #tpu.memory_space<vmem>>, %arg2: memref<2x32xf32, #tpu.memory_space<vmem>>, %arg3: memref<2x32xf32, #tpu.memory_space<vmem>>) attributes {dimension_semantics = [], scalar_prefetch = 0 : i64, scratch_operands = 0 : i64, tpu.core_type = #tpu.core_type<tc>} {
    %c0 = arith.constant 0 : index
    %c0_0 = arith.constant 0 : index
    %0 = vector.load %arg1[%c0, %c0_0] : memref<2x32xf32, #tpu.memory_space<vmem>>, vector<2x32xf32>
    %cst = arith.constant 5.000000e-01 : f32
    %1 = vector.broadcast %cst : f32 to vector<2x32xf32>
    %2 = arith.mulf %1, %0 : vector<2x32xf32>
    %3 = math.exp %2 : vector<2x32xf32>
    %c0_1 = arith.constant 0 : index
    %c0_2 = arith.constant 0 : index
    %4 = vector.load %arg2[%c0_1, %c0_2] : memref<2x32xf32, #tpu.memory_space<vmem>>, vector<2x32xf32>
    %5 = arith.mulf %4, %3 : vector<2x32xf32>
    %c0_3 = arith.constant 0 : index
    %c0_4 = arith.constant 0 : index
    %6 = vector.load %arg0[%c0_3, %c0_4] : memref<2x32xf32, #tpu.memory_space<vmem>>, vector<2x32xf32>
    %7 = arith.addf %5, %6 : vector<2x32xf32>
    %c0_5 = arith.constant 0 : index
    %c0_6 = arith.constant 0 : index
    %8 = vector.load %arg3[%c0_5, %c0_6] : memref<2x32xf32, #tpu.memory_space<vmem>>, vector<2x32xf32>
    tpu.vector_store %arg3[%c0_5, %c0_6], %7 {strides = array<i32>} : memref<2x32xf32, #tpu.memory_space<vmem>>, vector<2x32xf32>,
    return
  }
}

</mosaic_0001>

<bundles_post_ra>
// kernel: tpu_custom_call.1
= control target key start
LH: loop header
LB: loop body
LE: loop exit
PB: predicated region body
PF: predicated region fallthrough
CT: control target
= control target key end

     0   :  { %8 = vsyncpa [#allocation3], 0  ;;  %s171_s0 = inlined_call_operand.hbm [shape: f32[2,32], index: 0, kind: input, shape index: {}]   ;;  %s172_s1 = inlined_call_operand.hbm [shape: f32[2,32], index: 1, kind: input, shape index: {}]   ;;  %s173_s2 = inlined_call_operand.vmem [shape: f32[2,32], index: 2, kind: input, shape index: {}]   ;;  %s174_s3 = inlined_call_operand.hbm [shape: f32[2,32], index: 3, kind: output, shape index: {}]  }
   0x1   :  { %9 = vsyncpa [#allocation6], 0 }
   0x2   :  { %10 = vsyncpa [#allocation4], 0  ;;  %s136_s12 = smov [#allocation2]   ;;  %s137_s14 = smov [#allocation5]  }
   0x3   :  { %s17_s13 = sshll.u32 %s136_s12, 4  ;;  %s27_s15 = sshll.u32 %s137_s14, 4  ;;  %s18_s13 = int_to_ptr.vmem [resolvable:$true] %s17_s13  ;;  %s28_s15 = int_to_ptr.vmem [resolvable:$true] %s27_s15 }
   0x4   :  { %s78_s16 = scalar_lea.vmem %s18_s13, 32  ;;  %p83_p1 = scmp.lt.s32.totalorder %s18_s13, %s18_s13 }
   0x5   :  { %p79_p0 = scmp.ne.s32.totalorder %s18_s13, %s78_s16  ;;  %p84_p2 = scmp.lt.s32.totalorder %s78_s16, %s78_s16 }
   0x7   :  { %p85_p3 = por %p84_p2, %p83_p1 }
   0x9   :  { %p86_p4 = pnand %p85_p3, %p79_p0 }
   0xb   :  { %89 = shalt.err (!%p86_p4)
}
   0xc   :  { %20 = dma.hbm_to_vmem [thread:$0]  %s171_s0, 32, %s18_s13, [#allocation3]  }
   0xd   :  { %s98_s19 = scalar_lea.vmem %s28_s15, 32  ;;  %p103_p6 = scmp.lt.s32.totalorder %s28_s15, %s28_s15 }
   0xe   :  { %p99_p5 = scmp.ne.s32.totalorder %s28_s15, %s98_s19  ;;  %p104_p7 = scmp.lt.s32.totalorder %s98_s19, %s98_s19 }
  0x10   :  { %p105_p8 = por %p104_p7, %p103_p6 }
  0x12   :  { %p106_p9 = pnand %p105_p8, %p99_p5 }
  0x14   :  { %109 = shalt.err (!%p106_p9)
}
  0x15   :  { %30 = dma.hbm_to_vmem [thread:$0]  %s172_s1, 32, %s28_s15, [#allocation6]  }
  0x16   :  { %130 = dma.done.wait [#allocation3], 32  }
  0x17   :  { %131 = vsyncadd [#allocation3], 4294967264 }
  0x18   :  { %132 = dma.done.wait [#allocation6], 32  }
  0x19   :  { %133 = vsyncadd [#allocation6], 4294967264  ;;  %v39_v0 = vld [vmem:[#allocation5] sm:$0x3]  ;;  %v43_v3 = vld [vmem:[%s173_s2] sm:$0x3] }
  0x1a   :  { %v40_v1 = vmul.f32 0.5, %v39_v0  ;;  %v45_v5 = vld [vmem:[#allocation2] sm:$0x3]  ;;  %s138_s23 = smov [#allocation7]   ;;  %vm47_vm0 = vcmask 254976  }
  0x1b   :  { %s55_s24 = sshll.u32 %s138_s23, 4  ;;  %s56_s24 = int_to_ptr.vmem [resolvable:$true] %s55_s24 }
  0x1c   :  { %v41_v2 = vmul.f32 1.442695, %v40_v1  ;;  %s110_s1 = scalar_lea.vmem %s56_s24, 32  ;;  %p115_p11 = scmp.lt.s32.totalorder %s56_s24, %s56_s24 }
  0x1d   :  { %p111_p10 = scmp.ne.s32.totalorder %s56_s24, %s110_s1  ;;  %p116_p12 = scmp.lt.s32.totalorder %s110_s1, %s110_s1 }
  0x1e   :  { %68 = vpow2.f32 %v41_v2 }
  0x1f   :  { %p117_p13 = por %p116_p12, %p115_p11 }
  0x21   :  { %p118_p0 = pnand %p117_p13, %p111_p10 }
  0x2b   :  { %v69_v4 = vpop.eup %68 }
  0x2c   :  { %v44_v6 = vmul.f32 %v69_v4, %v43_v3 }
  0x2e   :  { %v46_v7 = vadd.f32 %v45_v5, %v44_v6 }
  0x30   :  { %48 = vst.msk [vmem:[#allocation7] sm:$0x3] %vm47_vm0, %v46_v7 }
  0x31   :  { %121 = shalt.err (!%p118_p0)
}
  0x32   :  { %58 = dma.vmem_to_hbm [thread:$0]  %s56_s24, 32, %s174_s3, [#allocation4]  }
  0x33   :  { %134 = dma.done.wait [#allocation4], 32  }
  0x34   :  { %135 = vsyncadd [#allocation4], 4294967264 }
  0x35   :  { %62 = vsyncpa [#allocation3], 1 }
  0x36   :  { %63 = vsyncpa [#allocation6], 1 }
  0x37   :  { %64 = vsyncpa [#allocation4], 1 }

</bundles_post_ra>
